<compile_context>
chip_gen: v7x
topology: tpu7x:2x2x1
jax: 0.10.0
libtpu: 0.0.40
codegen_flags: <defaults>
</compile_context>

<pallas_src>
import functools

import numpy as np
import jax
import jax.numpy as jnp
from jax.experimental import pallas as pl
from jax.experimental.pallas import tpu as pltpu

_LANES = 128


def _ceil_div(a, b):
    return -(-a // b)


def _round_up(a, b):
    return _ceil_div(a, b) * b


def _events_loss_kernel(pred_ref, targ_ref, scale_ref, out_ref, *,
                        epsilon, binary_targets):
    step = pl.program_id(1)

    @pl.when(step == 0)
    def _init():
        out_ref[...] = jnp.zeros_like(out_ref)

    p = pred_ref[...].astype(jnp.float32)
    t = targ_ref[...].astype(jnp.float32)

    if binary_targets:
        # For t in {0,1}: identical to t*log(p+eps) + (1-t)*log(1-p+eps),
        # but only one EUP transcendental per element.
        bce = jnp.log(jnp.where(t > 0.5, p, 1.0 - p) + epsilon)
    else:
        bce = (t * jnp.log(p + epsilon)
               + (1.0 - t) * jnp.log((1.0 - p) + epsilon))

    # Pure VPU vreg adds into the resident (8,128) accumulator block; no
    # cross-lane XLU reduce and no scalar RMW in the hot loop.
    out_ref[...] += bce.reshape(-1, 8, _LANES).sum(axis=0)

    @pl.when(step == pl.num_programs(1) - 1)
    def _finalize():
        # scale already carries -w_norm[lane % E] / (B*E).
        out_ref[...] *= scale_ref[...]


@functools.partial(
    jax.jit,
    static_argnames=("weights", "epsilon", "tile_rows", "binary_targets",
                     "num_splits"))
def events_spotting_loss(pred_events, target_events, weights=(1, 3),
                         epsilon=1e-9, tile_rows=2048, binary_targets=True,
                         num_splits=2):
    """Pallas equivalent of Events_Spotting_Loss.forward. Returns f32 scalar."""
    batch, num_events = pred_events.shape
    assert target_events.shape == (batch, num_events)
    assert len(weights) == num_events, "weights must have one entry per event"
    assert _LANES % num_events == 0, (
        "lane-constant weight plane requires num_events to divide 128")

    total = batch * num_events
    rows = _ceil_div(total, _LANES)

    # Use both TensorCores (v7x) only when each core gets at least one 8-row tile.
    splits = num_splits if rows >= num_splits * 8 else 1
    n_tiles = max(splits, _ceil_div(rows, int(tile_rows)))
    n_tiles = _round_up(n_tiles, splits)
    tile_r = _round_up(_ceil_div(rows, n_tiles), 8)     # (8,128)-aligned, balanced
    rows_padded = n_tiles * tile_r
    steps = n_tiles // splits
    pad = rows_padded * _LANES - total

    # Single fused pad per input, original dtype preserved through the DMA.
    # Padded elements (p=0, t=0) contribute log(1+eps) == 0.0 exactly in f32.
    pred2 = jnp.pad(pred_events.reshape(-1), (0, pad)).reshape(rows_padded, _LANES)
    targ2 = jnp.pad(target_events.reshape(-1), (0, pad)).reshape(rows_padded, _LANES)

    # Compile-time (numpy) weight preprocessing folded into one tiny constant
    # plane: -w_norm[lane % E] / (B*E), identical on every sublane.
    w = np.asarray(weights, np.float64)
    w = w / w.sum()
    lane_scale = -(w[np.arange(_LANES) % num_events] / float(total))
    scale = jnp.asarray(
        np.broadcast_to(lane_scale, (8, _LANES)).astype(np.float32))

    in_block = pl.BlockSpec((tile_r, _LANES), lambda c, i: (c * steps + i, 0))
    scale_block = pl.BlockSpec((8, _LANES), lambda c, i: (0, 0))   # resident
    out_block = pl.BlockSpec((8, _LANES), lambda c, i: (c, 0))     # per-core acc

    out = pl.pallas_call(
        functools.partial(_events_loss_kernel, epsilon=float(epsilon),
                          binary_targets=bool(binary_targets)),
        out_shape=jax.ShapeDtypeStruct((splits * 8, _LANES), jnp.float32),
        grid=(splits, steps),
        in_specs=[in_block, in_block, scale_block],
        out_specs=out_block,
        compiler_params=pltpu.CompilerParams(
            dimension_semantics=("parallel", "arbitrary")),
    )(pred2, targ2, scale)

    # Tiny epilogue: sum of splits*8*128 f32 partials (scale/mean/sign already
    # applied in-kernel), so this IS the loss.
    return jnp.sum(out)


def _reference_loss(pred, targ, weights=(1, 3), epsilon=1e-9):
    w = jnp.asarray(weights, jnp.float32).reshape(1, -1)
    w = w / jnp.sum(w)
    bce = (targ * jnp.log(pred + epsilon)
           + (1.0 - targ) * jnp.log(1.0 - pred + epsilon))
    return -jnp.mean(w * bce)


if __name__ == "__main__":
    # Shapes implied by the module: (batch, num_events) with num_events = 2.
    B, E = 2, 2
    key = jax.random.PRNGKey(0)
    k1, k2, k3, k4, k5, k6 = jax.random.split(key, 6)

    # 1) Tiny batch, binary targets (default one-log fast path).
    pred = jax.random.uniform(k1, (B, E), jnp.float32, minval=0.01, maxval=0.99)
    targ = (jax.random.uniform(k2, (B, E)) > 0.5).astype(jnp.float32)
    loss = jax.block_until_ready(events_spotting_loss(pred, targ))
    ref = _reference_loss(pred, targ)
    assert jnp.allclose(loss, ref, rtol=1e-5, atol=1e-6), (loss, ref)

    # 2) Larger batch, small tiles: exercises multi-step accumulation and the
    #    2-way parallel (dual-TensorCore) split.
    B2 = 3000
    pred2 = jax.random.uniform(k3, (B2, E), jnp.float32, minval=0.01, maxval=0.99)
    targ2 = (jax.random.uniform(k4, (B2, E)) > 0.5).astype(jnp.float32)
    loss2 = jax.block_until_ready(
        events_spotting_loss(pred2, targ2, tile_rows=8))
    ref2 = _reference_loss(pred2, targ2)
    assert jnp.allclose(loss2, ref2, rtol=1e-5, atol=1e-6), (loss2, ref2)

    # 3) Soft labels: two-log path behind the flag.
    B3 = 64
    pred3 = jax.random.uniform(k5, (B3, E), jnp.float32, minval=0.01, maxval=0.99)
    targ3 = jax.random.uniform(k6, (B3, E), jnp.float32)
    loss3 = jax.block_until_ready(
        events_spotting_loss(pred3, targ3, binary_targets=False))
    ref3 = _reference_loss(pred3, targ3)
    assert jnp.allclose(loss3, ref3, rtol=1e-5, atol=1e-6), (loss3, ref3)

    print("KERNEL_OK")
</pallas_src>

<mosaic_0001>
module attributes {stable_mosaic.version = 11 : i64} {
  func.func @_events_loss_kernel(%arg0: i32, %arg1: i32, %arg2: memref<8x128xf32, #tpu.memory_space<vmem>>, %arg3: memref<8x128xf32, #tpu.memory_space<vmem>>, %arg4: memref<8x128xf32, #tpu.memory_space<vmem>>, %arg5: memref<8x128xf32, #tpu.memory_space<vmem>>) attributes {dimension_semantics = [#tpu.dimension_semantics<parallel>, #tpu.dimension_semantics<arbitrary>], iteration_bounds = array<i64: 1, 1>, scalar_prefetch = 0 : i64, scratch_operands = 0 : i64, tpu.core_type = #tpu.core_type<tc>, window_params = [{transform_indices = @transform_0, window_bounds = array<i64: 8, 128>}, {transform_indices = @transform_1, window_bounds = array<i64: 8, 128>}, {pipeline_mode = #tpu.pipeline_mode<synchronous>, transform_indices = @transform_2, window_bounds = array<i64: 8, 128>}, {transform_indices = @transform_3, window_bounds = array<i64: 8, 128>}]} {
    %c0_i32 = arith.constant 0 : i32
    %0 = arith.cmpi eq, %arg1, %c0_i32 : i32
    %1 = arith.extui %0 : i1 to i32
    %c0_i32_0 = arith.constant 0 : i32
    %2 = arith.cmpi ne, %1, %c0_i32_0 : i32
    scf.if %2 {
      %cst_13 = arith.constant 0.000000e+00 : f32
      %21 = vector.broadcast %cst_13 : f32 to vector<8x128xf32>
      %c0_14 = arith.constant 0 : index
      %c0_15 = arith.constant 0 : index
      %22 = vector.load %arg5[%c0_14, %c0_15] : memref<8x128xf32, #tpu.memory_space<vmem>>, vector<8x128xf32>
      tpu.vector_store %arg5[%c0_14, %c0_15], %21 {strides = array<i32>} : memref<8x128xf32, #tpu.memory_space<vmem>>, vector<8x128xf32>,
    } else {
    }
    %c0 = arith.constant 0 : index
    %c0_1 = arith.constant 0 : index
    %3 = vector.load %arg2[%c0, %c0_1] : memref<8x128xf32, #tpu.memory_space<vmem>>, vector<8x128xf32>
    %c0_2 = arith.constant 0 : index
    %c0_3 = arith.constant 0 : index
    %4 = vector.load %arg3[%c0_2, %c0_3] : memref<8x128xf32, #tpu.memory_space<vmem>>, vector<8x128xf32>
    %cst = arith.constant 5.000000e-01 : f32
    %5 = vector.broadcast %cst : f32 to vector<8x128xf32>
    %6 = arith.cmpf ogt, %4, %5 : vector<8x128xf32>
    %cst_4 = arith.constant 1.000000e+00 : f32
    %7 = vector.broadcast %cst_4 : f32 to vector<8x128xf32>
    %8 = arith.subf %7, %3 : vector<8x128xf32>
    %9 = arith.select %6, %3, %8 : vector<8x128xi1>, vector<8x128xf32>
    %cst_5 = arith.constant 9.99999971E-10 : f32
    %10 = vector.broadcast %cst_5 : f32 to vector<8x128xf32>
    %11 = arith.addf %9, %10 : vector<8x128xf32>
    %12 = math.log %11 : vector<8x128xf32>
    %c0_6 = arith.constant 0 : index
    %c0_7 = arith.constant 0 : index
    %13 = vector.load %arg5[%c0_6, %c0_7] : memref<8x128xf32, #tpu.memory_space<vmem>>, vector<8x128xf32>
    %14 = vector.shape_cast %12 : vector<8x128xf32> to vector<1x8x128xf32>
    %cst_8 = arith.constant dense<0.000000e+00> : vector<8x128xf32>
    %15 = vector.multi_reduction <add>, %14, %cst_8 [0] : vector<1x8x128xf32> to vector<8x128xf32>
    %16 = arith.addf %13, %15 : vector<8x128xf32>
    %c0_9 = arith.constant 0 : index
    %c0_10 = arith.constant 0 : index
    %17 = vector.load %arg5[%c0_9, %c0_10] : memref<8x128xf32, #tpu.memory_space<vmem>>, vector<8x128xf32>
    tpu.vector_store %arg5[%c0_9, %c0_10], %16 {strides = array<i32>} : memref<8x128xf32, #tpu.memory_space<vmem>>, vector<8x128xf32>,
    %c0_i32_11 = arith.constant 0 : i32
    %18 = arith.cmpi eq, %arg1, %c0_i32_11 : i32
    %19 = arith.extui %18 : i1 to i32
    %c0_i32_12 = arith.constant 0 : i32
    %20 = arith.cmpi ne, %19, %c0_i32_12 : i32
    scf.if %20 {
      %c0_13 = arith.constant 0 : index
      %c0_14 = arith.constant 0 : index
      %21 = vector.load %arg5[%c0_13, %c0_14] : memref<8x128xf32, #tpu.memory_space<vmem>>, vector<8x128xf32>
      %c0_15 = arith.constant 0 : index
      %c0_16 = arith.constant 0 : index
      %22 = vector.load %arg4[%c0_15, %c0_16] : memref<8x128xf32, #tpu.memory_space<vmem>>, vector<8x128xf32>
      %23 = arith.mulf %21, %22 : vector<8x128xf32>
      %c0_17 = arith.constant 0 : index
      %c0_18 = arith.constant 0 : index
      %24 = vector.load %arg5[%c0_17, %c0_18] : memref<8x128xf32, #tpu.memory_space<vmem>>, vector<8x128xf32>
      tpu.vector_store %arg5[%c0_17, %c0_18], %23 {strides = array<i32>} : memref<8x128xf32, #tpu.memory_space<vmem>>, vector<8x128xf32>,
    } else {
    }
    return
  }
  func.func @transform_0(%arg0: i32, %arg1: i32) -> (i32, i32) {
    %c1_i32 = arith.constant 1 : i32
    %0 = arith.muli %arg0, %c1_i32 : i32
    %1 = arith.addi %0, %arg1 : i32
    %c0_i32 = arith.constant 0 : i32
    %c0_i32_0 = arith.constant 0 : i32
    return %1, %c0_i32 : i32, i32
  }
  func.func @transform_1(%arg0: i32, %arg1: i32) -> (i32, i32) {
    %c1_i32 = arith.constant 1 : i32
    %0 = arith.muli %arg0, %c1_i32 : i32
    %1 = arith.addi %0, %arg1 : i32
    %c0_i32 = arith.constant 0 : i32
    %c0_i32_0 = arith.constant 0 : i32
    return %1, %c0_i32 : i32, i32
  }
  func.func @transform_2(%arg0: i32, %arg1: i32) -> (i32, i32) {
    %c0_i32 = arith.constant 0 : i32
    %c0_i32_0 = arith.constant 0 : i32
    %c0_i32_1 = arith.constant 0 : i32
    return %c0_i32, %c0_i32_0 : i32, i32
  }
  func.func @transform_3(%arg0: i32, %arg1: i32) -> (i32, i32) {
    %c0_i32 = arith.constant 0 : i32
    %c0_i32_0 = arith.constant 0 : i32
    return %arg0, %c0_i32 : i32, i32
  }
}

</mosaic_0001>

<bundles_post_ra>
// kernel: events_spotting_loss.1
= control target key start
LH: loop header
LB: loop body
LE: loop exit
PB: predicated region body
PF: predicated region fallthrough
CT: control target
= control target key end

     0   :  { %s123_s0 = inlined_call_operand.vmem [shape: f32[8,128], index: 0, kind: input, shape index: {}]   ;;  %s124_s1 = inlined_call_operand.vmem [shape: f32[8,128], index: 1, kind: input, shape index: {}]   ;;  %s125_s2 = inlined_call_operand.vmem [shape: f32[8,128], index: 2, kind: input, shape index: {}]   ;;  %s126_s3 = inlined_call_operand.vmem [shape: f32[8,128], index: 3, kind: output, shape index: {}]  }
   0x1   :  { %v53_v0 = vld [vmem:[%s123_s0] sm:$0xff] }
   0x2   :  { %v54_v1 = vld [vmem:[%s124_s1] sm:$0xff]  ;;  %v56_v2 = vsub.f32 1.0, %v53_v0 }
   0x3   :  { %vm55_vm0 = vcmp.gt.f32.partialorder %v54_v1, 0.5  ;;  %v69_v7 = vld [vmem:[%s125_s2] sm:$0xff] }
   0x4   :  { %v57_v3 = vsel %vm55_vm0, %v53_v0, %v56_v2 }
   0x5   :  { %v58_v4 = vadd.f32 1e-09, %v57_v3 }
   0x7   :  { %89 = vlog2.f32 %v58_v4 }
  0x11   :  { %v90_v5 = vpop.eup %89 }
  0x12   :  { %v60_v6 = vmul.f32 0.6931472, %v90_v5 }
  0x14   :  { %v70_v8 = vmul.f32 %v69_v7, %v60_v6 }
  0x16   :  { %71 = vst [vmem:[%s126_s3] sm:$0xff] %v70_v8 }

</bundles_post_ra>
